<compile_context>
chip_gen: v7x
topology: tpu7x:2x2x1
jax: 0.10.0
libtpu: 0.0.40
codegen_flags: <defaults>
</compile_context>

<pallas_src>
import jax
import jax.numpy as jnp
from jax.experimental import pallas as pl
from jax.experimental.pallas import tpu as pltpu


def _resblock_kernel(x_ref, w_ref, o_ref):
    # x_ref: (n_blk, C_in, t_hw)   activation tile (native NCHW-flattened)
    # w_ref: (C_out, C_in)         1x1-conv weight, resident across the grid
    # o_ref: (n_blk, C_out, t_hw)  output tile (lane-dense last dim)
    w = w_ref[...]
    n_blk = x_ref.shape[0]  # small static int (<= 8): unrolled at trace time
    for i in range(n_blk):
        xi = x_ref[i]  # (C_in, t_hw)
        # TODO(synk): pass precision=jax.lax.Precision.HIGHEST if bit-strict
        # f32 parity with a PyTorch f32 reference is required at large C.
        y = jnp.dot(w, xi, preferred_element_type=jnp.float32)
        o_ref[i] = (y + xi.astype(jnp.float32)).astype(o_ref.dtype)


def _physical_vmem_bytes():
    try:
        info = pltpu.get_tpu_info()
        v = getattr(info, "vmem_capacity_bytes", None)
        if v:
            return int(v)
    except Exception:
        pass
    return 64 << 20  # most conservative generation (v7x, per-TensorCore)


def residual_block_pallas(x_nchw, weight, *, cast_to_bf16=False):
    """x_nchw: (N, C, H, W); weight: (C_out, C_in, 1, 1) with C_out == C_in == C.

    cast_to_bf16=True stores activations/weight in bf16 in HBM (f32 accumulate,
    f32-typed output) for ~2x HBM traffic reduction on this HBM-bound kernel.
    Default False to preserve the PyTorch f32 semantics exactly.
    """
    N, C, H, W = x_nchw.shape
    C_out, C_in, kh, kw = weight.shape
    assert kh == 1 and kw == 1
    assert C_out == C_in == C, "residual add requires in_f == out_f"

    HW = H * W
    out_dtype = x_nchw.dtype

    x3 = x_nchw.reshape(N, C, HW)        # free reshape, no transpose glue
    w2 = weight.reshape(C_out, C_in)     # (C_out, C_in), no transpose needed
    if cast_to_bf16:
        x3 = x3.astype(jnp.bfloat16)
        w2 = w2.astype(jnp.bfloat16)

    itemsize = jnp.dtype(x3.dtype).itemsize
    out_itemsize = jnp.dtype(out_dtype).itemsize
    w_bytes = C_out * C_in * jnp.dtype(w2.dtype).itemsize

    # Generation-aware VMEM budget: v7x has 64 MiB physical per TC (cap ~52),
    # v5e/v6e have 128 MiB (cap 100). Leave headroom for Mosaic internals.
    physical = _physical_vmem_bytes()
    budget = min(physical - (12 << 20), 100 << 20)

    # Target ~4 MiB per activation tile (MiB-scale DMAs hit 85%+ of the HBM
    # roofline), trimmed so 2x(in) + 2x(out) + 2x(weight) fits the budget.
    avail_for_tiles = budget - 2 * w_bytes - (2 << 20)
    target_tile = max(min(4 << 20, avail_for_tiles // 4), C * 128 * itemsize)
    # TODO(synk): for very large C (weight >> VMEM budget) add a C_in-reduction
    # grid axis with an f32 accumulator instead of a resident (C, C) weight.

    per_batch_bytes = C * HW * itemsize
    if per_batch_bytes <= target_tile:
        # Whole HW fits in one tile: amortize grid-step overhead by blocking
        # several batch items per step instead.
        t_hw = HW
        n_blk = max(1, min(N, target_tile // per_batch_bytes, 8))
    else:
        col_block = C * 128 * itemsize
        n_cols = max(1, target_tile // col_block)
        t_hw = min(n_cols * 128, (HW // 128) * 128) if HW >= 128 else HW
        n_blk = 1

    n_blocks = -(-N // n_blk)
    hw_blocks = -(-HW // t_hw)

    # v7x has 2 TensorCores sharing HBM: make sure the parallel grid has at
    # least 2 iterations so both cores get work (no-op on v5e/v6e).
    if n_blocks * hw_blocks < 2:
        if n_blk > 1:
            n_blk = -(-n_blk // 2)
        elif HW % 128 == 0 and t_hw >= 256:
            t_hw = ((t_hw // 2 + 127) // 128) * 128
        n_blocks = -(-N // n_blk)
        hw_blocks = -(-HW // t_hw)

    # VMEM limit from the actual double-buffered footprint, clamped to budget.
    in_tile = n_blk * C * t_hw * itemsize
    out_tile = n_blk * C_out * t_hw * out_itemsize
    footprint = 2 * (in_tile + out_tile) + 2 * w_bytes + (2 << 20)
    vmem_limit = int(min(max(footprint, 16 << 20), budget))

    x_block = (n_blk, C_in, t_hw)
    o_block = (n_blk, C_out, t_hw)

    # Put the larger parallel extent first (megacore shards the leading axis).
    if hw_blocks >= n_blocks:
        grid = (hw_blocks, n_blocks)
        act_map = lambda j, n: (n, 0, j)
        w_map = lambda j, n: (0, 0)
    else:
        grid = (n_blocks, hw_blocks)
        act_map = lambda n, j: (n, 0, j)
        w_map = lambda n, j: (0, 0)

    out3 = pl.pallas_call(
        _resblock_kernel,
        out_shape=jax.ShapeDtypeStruct((N, C_out, HW), out_dtype),
        grid_spec=pltpu.PrefetchScalarGridSpec(
            num_scalar_prefetch=0,
            grid=grid,
            in_specs=[
                # Activation tile, multiple batch items per step when HW small.
                pl.BlockSpec(x_block, act_map),
                # Full weight, grid-invariant (redundant copies elided).
                pl.BlockSpec((C_out, C_in), w_map),
            ],
            out_specs=pl.BlockSpec(o_block, act_map),
        ),
        compiler_params=pltpu.CompilerParams(
            dimension_semantics=("parallel", "parallel"),
            vmem_limit_bytes=vmem_limit,
        ),
    )(x3, w2)

    # Free reshape back to NCHW.
    return out3.reshape(N, C_out, H, W)


if __name__ == "__main__":
    key = jax.random.PRNGKey(0)
    kx, kw = jax.random.split(key)

    N, C, H, W = 2, 4, 16, 16   # in_f == out_f == 4
    x = jax.random.normal(kx, (N, C, H, W), dtype=jnp.float32)

    # Deterministic synthetic 1x1 conv weight, PyTorch-like uniform init scale.
    fan_in = C * 1 * 1
    bound = 1.0 / (fan_in ** 0.5)
    weight = jax.random.uniform(
        kw, (C, C, 1, 1), dtype=jnp.float32, minval=-bound, maxval=bound
    )

    out = residual_block_pallas(x, weight)
    out = jax.block_until_ready(out)

    # Reference check (plain JAX): 1x1 conv == channel matmul, plus residual.
    ref = jnp.einsum("oc,nchw->nohw", weight[:, :, 0, 0], x) + x
    assert out.shape == (N, C, H, W)
    assert jnp.allclose(out, ref, atol=1e-5, rtol=1e-5)

    print("KERNEL_OK")
</pallas_src>

<mosaic_0001>
module attributes {stable_mosaic.version = 11 : i64} {
  func.func @_resblock_kernel(%arg0: i32, %arg1: i32, %arg2: memref<1x4x256xf32, #tpu.memory_space<vmem>>, %arg3: memref<4x4xf32, #tpu.memory_space<vmem>>, %arg4: memref<1x4x256xf32, #tpu.memory_space<vmem>>) attributes {dimension_semantics = [#tpu.dimension_semantics<parallel>, #tpu.dimension_semantics<parallel>], iteration_bounds = array<i64: 2, 1>, scalar_prefetch = 0 : i64, scratch_operands = 0 : i64, tpu.core_type = #tpu.core_type<tc>, window_params = [{transform_indices = @transform_0, window_bounds = array<i64: 1, 4, 256>}, {pipeline_mode = #tpu.pipeline_mode<synchronous>, transform_indices = @transform_1, window_bounds = array<i64: 4, 4>}, {transform_indices = @transform_2, window_bounds = array<i64: 1, 4, 256>}]} {
    %c0 = arith.constant 0 : index
    %c0_0 = arith.constant 0 : index
    %0 = vector.load %arg3[%c0, %c0_0] : memref<4x4xf32, #tpu.memory_space<vmem>>, vector<4x4xf32>
    %c0_1 = arith.constant 0 : index
    %c0_2 = arith.constant 0 : index
    %c0_3 = arith.constant 0 : index
    %1 = vector.load %arg2[%c0_1, %c0_2, %c0_3] : memref<1x4x256xf32, #tpu.memory_space<vmem>>, vector<1x4x256xf32>
    %2 = vector.shape_cast %1 : vector<1x4x256xf32> to vector<4x256xf32>
    %cst = arith.constant dense<0.000000e+00> : vector<4x256xf32>
    %3 = tpu.matmul %0, %2, %cst {dimension_numbers = #tpu.dot_dimension_numbers<[1], [0], [0], [1], [0, 0, 1, 1], [], []>} : vector<4x4xf32>, vector<4x256xf32>, vector<4x256xf32> -> vector<4x256xf32>
    %4 = arith.addf %3, %2 : vector<4x256xf32>
    %c0_4 = arith.constant 0 : index
    %c0_5 = arith.constant 0 : index
    %c0_6 = arith.constant 0 : index
    %5 = vector.load %arg4[%c0_4, %c0_5, %c0_6] : memref<1x4x256xf32, #tpu.memory_space<vmem>>, vector<1x4x256xf32>
    %6 = vector.shape_cast %5 : vector<1x4x256xf32> to vector<4x256xf32>
    %7 = vector.shape_cast %4 : vector<4x256xf32> to vector<1x4x256xf32>
    tpu.vector_store %arg4[%c0_4, %c0_5, %c0_6], %7 {strides = array<i32>} : memref<1x4x256xf32, #tpu.memory_space<vmem>>, vector<1x4x256xf32>,
    return
  }
  func.func @transform_0(%arg0: i32, %arg1: i32) -> (i32, i32, i32) {
    %c0_i32 = arith.constant 0 : i32
    %c0_i32_0 = arith.constant 0 : i32
    return %arg0, %c0_i32, %arg1 : i32, i32, i32
  }
  func.func @transform_1(%arg0: i32, %arg1: i32) -> (i32, i32) {
    %c0_i32 = arith.constant 0 : i32
    %c0_i32_0 = arith.constant 0 : i32
    %c0_i32_1 = arith.constant 0 : i32
    return %c0_i32, %c0_i32_0 : i32, i32
  }
  func.func @transform_2(%arg0: i32, %arg1: i32) -> (i32, i32, i32) {
    %c0_i32 = arith.constant 0 : i32
    %c0_i32_0 = arith.constant 0 : i32
    return %arg0, %c0_i32, %arg1 : i32, i32, i32
  }
}

</mosaic_0001>

<bundles_post_ra>
// kernel: tpu_custom_call.1
= control target key start
LH: loop header
LB: loop body
LE: loop exit
PB: predicated region body
PF: predicated region fallthrough
CT: control target
= control target key end

     0   :  { %7 = vsyncpa [#allocation3], 0  ;;  %s872_s0 = inlined_call_operand.hbm [shape: f32[2,4,256], index: 0, kind: input, shape index: {}]   ;;  %s873_s1 = inlined_call_operand.hbm [shape: f32[4,4], index: 1, kind: input, shape index: {}]   ;;  %s874_s2 = inlined_call_operand.hbm [shape: f32[2,4,256], index: 2, kind: output, shape index: {}]  }
   0x1   :  { %9 = vsyncpa [#allocation3 + $0x1], 0 }
   0x2   :  { %10 = vsyncpa [#allocation6], 0 }
   0x3   :  { %11 = vsyncpa [#allocation4], 0 }
   0x4   :  { %13 = vsyncpa [#allocation4 + $0x1], 0  ;;  %s656_s9 = smov 0   ;;  %s658_s10 = smov 0  }
   0x5   :  { %s660_s11 = smov 0   ;;  %s662_s12 = smov 0  }
   0x6   :  { %s664_s13 = smov 0   ;;  %s666_s14 = smov 0  }
   0x7 LB: > { %s394_s15 = sadd.s32 4294967295, %s635_s14   ;;  %s395_s16 = sadd.s32 4294967294, %s635_s14   ;;  %s635_s14 = sphi %s666_s14, %s19_s14   ;;  %s631_s13 = sphi %s664_s13, %s899_s13   ;;  %s627_s12 = sphi %s662_s12, %s898_s12   ;;  %s623_s11 = sphi %s660_s11, %s897_s11   ;;  %s619_s10 = sphi %s658_s10, %s896_s10   ;;  %s615_s9 = sphi %s656_s9, %s895_s9  }
   0x8   : > { %p53_p0 = scmp.ne.s32.totalorder %s619_s10, %s615_s9  ;;  %p690_p1 = scmp.eq.s32.totalorder %s394_s15, 0 }
   0x9   : > { %p694_p2 = scmp.eq.s32.totalorder %s394_s15, 1  ;;  %p106_p3 = scmp.eq.s32.totalorder %s395_s16, 1 }
   0xa   : > { %s879_s17 = scalar_select %p690_p1, 1, 0 }
   0xb   : > { %s880_s18 = scalar_select %p694_p2, 1, 0 }
   0xc   : > { %p700_p4 = por %p690_p1, %p53_p0  ;;  %p396_p5 = scmp.ge.s32.totalorder %s635_s14, 1 }
   0xd   : > { %p705_p6 = por %p106_p3, %p53_p0  ;;  %p113_p7 = scmp.lt.s32.totalorder %s635_s14, 3 }
   0xe   : > { %s881_s19 = scalar_select %p700_p4, 1, 0 }
   0xf   : > { %s882_s20 = scalar_select %p705_p6, 1, 0 }
  0x10   : > { %p710_p8 = pnand %p396_p5, %p113_p7  ;;  %s637_s22 = smov [#allocation5]  }
  0x11   : > { %s126_s23 = sshll.u32 %s637_s22, 4  ;;  %s31_s25 = sadd.s32 1, %s631_s13  ;;  %s127_s23 = int_to_ptr.vmem [resolvable:$true] %s126_s23 }
  0x12   : > { %s883_s21 = scalar_select %p710_p8, 1, 0 }
  0x13   : > { %p424_p10 = pneg %p710_p8  ;;  %s40_s26 = sadd.s32 1, %s623_s11 }
  0x14   : > { %p725_p12 = scmp.ge.s32.totalorder %s31_s25, 2  ;;  %s491_s30 = scalar_lea.hbm %s873_s1, 64 }
  0x15   : > { %p719_p11 = pnand %p424_p10, %p690_p1  ;;  %p492_p13 = scmp.ne.s32.totalorder %s873_s1, %s491_s30 }
  0x16   : > { %s885_s27 = scalar_select %p725_p12, 1, 0 }
  0x17   : > { %p493_p0 = pneg %p719_p11  ;;  %p498_p7 = scmp.lt.u32.totalorder %s491_s30, %s873_s1 }
  0x19   : > { %p494_p3 = pnand %p493_p0, %p492_p13 }
  0x1b   : > { %p495_p5 = pneg %p494_p3 }
  0x1d   : > { %p500_p10 = pnand %p498_p7, %p495_p5 }
  0x1f   : > { %503 = shalt.err (!%p500_p10)
}
  0x20   : > { %s504_s7 = scalar_lea.vmem %s127_s23, 64  ;;  %p512_p4 = scmp.lt.s32.totalorder %s127_s23, %s127_s23 }
  0x21   : > { %p505_p9 = scmp.ne.s32.totalorder %s127_s23, %s504_s7  ;;  %p513_p8 = scmp.lt.s32.totalorder %s504_s7, %s504_s7 }
  0x23   : > { %p507_p6 = pnand %p505_p9, %p493_p0  ;;  %p514_p2 = por %p513_p8, %p512_p4 }
  0x25   : > { %p508_p1 = pneg %p507_p6 }
  0x27   : > { %p515_p12 = pnand %p514_p2, %p508_p1 }
  0x29   : > { %518 = shalt.err (!%p515_p12)
}
  0x2a   : > { %427 = dma.hbm_to_vmem [thread:$0]  (!%p719_p11), %s873_s1, 64, %s127_s23, [#allocation6]  }
  0x2b   : > { %p886_p4 = scmp.ne.s32.totalorder %s885_s27, 0  ;;  %p47_p1 = scmp.ne.s32.totalorder %s623_s11, %s619_s10 }
  0x2c   : > { %p48_p2 = scmp.eq.s32.totalorder %s635_s14, 0  ;;  %p437_p6 = scmp.lt.s32.totalorder %s635_s14, 2 }
  0x2d   : > { %s901_s25 = smov (%p886_p4, %s31_s25), 0  ;;  %p887_p12 = scmp.ne.s32.totalorder %s880_s18, 0 }
  0x2e   : > { %s35_s16 = ssub.s32 %s631_s13, %s901_s25  ;;  %p49_p9 = por %p48_p2, %p47_p1 }
  0x2f   : > { %p38_p8 = scmp.eq.s32.totalorder %s35_s16, 0  ;;  %p757_p13 = por %p887_p12, %p47_p1 }
  0x30   : > { %s137_s24 = sand.u32 1, %s623_s11   ;;  %s414_s27 = sshll.u32 %s631_s13, 7 }
  0x31   : > { %s765_s28 = scalar_select %p38_p8, %s623_s11, %s40_s26  }
  0x32   : > { %s399_s23 = sshll.u32 %s137_s24, 3  ;;  %s771_s3 = scalar_lea.hbm %s872_s0, %s414_s27 }
  0x33   : > { %s141_s18 = scalar_lea.vmem [#allocation2], %s399_s23  ;;  %p775_p11 = pnand %p437_p6, %p49_p9 }
  0x34   : > { %s151_s4 = sshll.u32 %s141_s18, 4  ;;  %s138_s26 = scalar_lea.sflag [#allocation3], %s137_s24  ;;  %s773_s4 = int_to_ptr.vmem [resolvable:$true] %s151_s4 }
  0x35   : > { %s519_s6 = scalar_lea.hbm %s771_s3, 128  ;;  %p521_p3 = pneg %p775_p11 }
  0x36   : > { %p520_p0 = scmp.ne.s32.totalorder %s771_s3, %s519_s6  ;;  %s524_s15 = scalar_lea.hbm %s872_s0, 256 }
  0x37   : > { %p525_p10 = scmp.lt.u32.totalorder %s771_s3, %s872_s0  ;;  %p526_p4 = scmp.lt.u32.totalorder %s524_s15, %s519_s6 }
  0x38   : > { %p522_p5 = pnand %p521_p3, %p520_p0  ;;  %p528_p2 = scmp.lt.u32.totalorder %s519_s6, %s771_s3 }
  0x39   : > { %p527_p1 = por %p526_p4, %p525_p10 }
  0x3a   : > { %p523_p7 = pneg %p522_p5 }
  0x3b   : > { %p529_p6 = por %p528_p2, %p527_p1 }
  0x3d   : > { %p530_p8 = pnand %p529_p6, %p523_p7 }
  0x3f   : > { %533 = shalt.err (!%p530_p8)
}
  0x40   : > { %s534_s24 = scalar_lea.vmem %s773_s4, 128  ;;  %s638_s27 = smov [#allocation2]  }
  0x41   : > { %p535_p9 = scmp.ne.s32.totalorder %s773_s4, %s534_s24  ;;  %s539_s29 = sshll.u32 %s638_s27, 4  ;;  %s540_s29 = int_to_ptr.vmem [resolvable:$false] %s539_s29 }
  0x42   : > { %s541_s30 = scalar_lea.vmem %s540_s29, 256  ;;  %p542_p5 = scmp.lt.s32.totalorder %s773_s4, %s540_s29 }
  0x43   : > { %p537_p12 = pnand %p535_p9, %p521_p3  ;;  %p543_p10 = scmp.lt.s32.totalorder %s541_s30, %s534_s24 }
  0x45   : > { %p538_p0 = pneg %p537_p12  ;;  %p544_p4 = por %p543_p10, %p542_p5 }
  0x47   : > { %p545_p1 = pnand %p544_p4, %p538_p0 }
  0x49   : > { %548 = shalt.err (!%p545_p1)
}
  0x4a   : > { %431 = dma.hbm_to_vmem [thread:$0]  (!%p775_p11), %s771_s3, 128, %s773_s4, %s138_s26  }
  0x4b   : > { %p890_p7 = scmp.ne.s32.totalorder %s883_s21, 0 }
  0x4c   : > { %s807_s18 = sand.u32 (!%p890_p7), 1, %s619_s10   ;;  %p891_p3 = scmp.ne.s32.totalorder (!%p890_p7), %s881_s19, 0 }
  0x4d   : > { %160 = sbr.rel (%p890_p7) target bundleno = 324 (0x144), region = 28  ;;  %s403_s6 = sshll.u32 (!%p890_p7), %s807_s18, 3 }
  0x4e   : > { %s163_s7 = scalar_lea.sflag (!%p890_p7), [#allocation3], %s807_s18  ;;  %s166_s8 = scalar_lea.vmem (!%p890_p7), [#allocation2], %s403_s6 }
  0x54   : > { %602 = dma.done.wait (%p891_p3), %s163_s7, 128  }
  0x55   : > { %604 = vsyncadd (%p891_p3), %s163_s7, 4294967168  ;;  %p892_p2 = scmp.ne.s32.totalorder %s879_s17, 0 }
  0x57   : > { %606 = dma.done.wait (%p892_p2), [#allocation6], 64  }
  0x58   : > { %608 = vsyncadd (%p892_p2), [#allocation6], 4294967232  ;;  %v639_v0 = vmov 0.0   ;;  %v194_v1 = vld [vmem:[%s166_s8] sm:$0xff]  ;;  %vm202_vm0 = vcmask 1043456   ;;  %vm198_vm1 = vcmask 31744  }
  0x59   : > { %271 = vmatprep.mubr.f32.mxu0 %v639_v0  ;;  %v196_v2 = vcombine.high %v194_v1, %v194_v1  ;;  %v193_v3 = vld [vmem:[#allocation5] sm:$0xf]  ;;  %s415_s19 = sshll.u32 %s627_s12, 7  ;;  %s190_s21 = scalar_lea.vmem [#allocation7], %s403_s6 }
  0x5a   : > { %s300_s17 = sshll.u32 %s190_s21, 4  ;;  %s823_s5 = scalar_lea.hbm %s874_s2, %s415_s19  ;;  %s825_s17 = int_to_ptr.vmem [resolvable:$true] %s300_s17 }
  0x5b   : > { %406 = vmatprep.subr.msk.mxu0 %vm202_vm0, %v196_v2  ;;  %s284_s26 = scalar_lea.sflag [#allocation4], %s807_s18  ;;  %s549_s15 = scalar_lea.vmem %s825_s17, 128 }
  0x5c   : > { %407 = vmatpush1.msk.msra.mxu0 %vm202_vm0, %v194_v1  ;;  %p550_p11 = scmp.ne.s32.totalorder %s825_s17, %s549_s15  ;;  %s640_s12 = smov [#allocation7]  }
  0x5d   : > { %408 = vmatmul.mubr.msk.f32.vlgmr.msra.gmra.mrb[0].mxu0 %vm198_vm1, %v193_v3  ;;  %s553_s16 = sshll.u32 %s640_s12, 4  ;;  %s554_s16 = int_to_ptr.vmem [resolvable:$false] %s553_s16 }
  0x5e   : > { %p551_p6 = pnand %p550_p11, %p757_p13  ;;  %s555_s23 = scalar_lea.vmem %s554_s16, 256 }
  0x5f   : > { %p556_p9 = scmp.lt.s32.totalorder %s825_s17, %s554_s16  ;;  %p557_p12 = scmp.lt.s32.totalorder %s555_s23, %s549_s15 }
  0x60   : > { %p552_p8 = pneg %p551_p6 }
  0x61   : > { %p558_p0 = por %p557_p12, %p556_p9 }
  0x63   : > { %p559_p5 = pnand %p558_p0, %p552_p8 }
 0x130   : > { %v273_v4 = vpop.f32.mrb[0].mxu0 }
 0x131   : > { %v274_v5 = vadd.f32 %v273_v4, %v194_v1  ;;  %v275_v6 = vpop.f32.mrb[1].mxu0 }
 0x132   : > { %v276_v7 = vadd.f32 %v275_v6, %v196_v2 }
 0x134   : > { %v280_v8 = vcombine.low %v274_v5, %v276_v7 }
 0x136   : > { %282 = vst [vmem:[%s190_s21] sm:$0xff] %v280_v8 }
 0x137   : > { %562 = shalt.err (!%p559_p5)
}
 0x138   : > { %s563_s24 = scalar_lea.hbm %s823_s5, 128  ;;  %s567_s30 = scalar_lea.hbm %s874_s2, 256 }
 0x139   : > { %p564_p10 = scmp.ne.s32.totalorder %s823_s5, %s563_s24  ;;  %p568_p7 = scmp.lt.u32.totalorder %s823_s5, %s874_s2 }
 0x13a   : > { %p569_p3 = scmp.lt.u32.totalorder %s567_s30, %s563_s24  ;;  %p571_p11 = scmp.lt.u32.totalorder %s563_s24, %s823_s5 }
 0x13b   : > { %p565_p4 = pnand %p564_p10, %p757_p13 }
 0x13c   : > { %p570_p2 = por %p569_p3, %p568_p7 }
 0x13d   : > { %p566_p1 = pneg %p565_p4 }
 0x13e   : > { %p572_p6 = por %p571_p11, %p570_p2 }
 0x140   : > { %p573_p8 = pnand %p572_p6, %p566_p1 }
 0x142   : > { %576 = shalt.err (!%p573_p8)
}
 0x143   : > { %422 = dma.vmem_to_hbm [thread:$0]  (%p757_p13), %s825_s17, 128, %s823_s5, %s284_s26  }
 0x144 PF: > { %s312_s7 = sand.u32 1, %s615_s9   ;;  %p893_p9 = scmp.ne.s32.totalorder %s882_s20, 0 }
 0x145   : > { %p894_p12 = scmp.ge.s32.totalorder %s635_s14, 2  ;;  %s313_s8 = scalar_lea.sflag [#allocation4], %s312_s7 }
 0x147   : > { %p433_p0 = pnand %p894_p12, %p893_p9 }
 0x149   : > { %610 = dma.done.wait (!%p433_p0), %s313_s8, 128  }
 0x14a   : > { %612 = vsyncadd (!%p433_p0), %s313_s8, 4294967168  ;;  %s19_s14 = sadd.s32 1, %s635_s14   ;;  %s895_s9 = smov %s619_s10 }
 0x14b   : > { %p16_p5 = scmp.ge.s32.totalorder %s19_s14, 4   ;;  %s896_s10 = smov %s623_s11 }
 0x14c   : > { %s897_s11 = smov %s765_s28  ;;  %s898_s12 = smov %s631_s13 }
 0x14d   : > { %s899_s13 = smov %s901_s25  ;;  %18 = sbr.rel (!%p16_p5) target bundleno = 7 (0x7), region = 77 }
 0x154   :  { %318 = vsyncpa [#allocation3], 1 }
 0x155   :  { %320 = vsyncpa [#allocation3 + $0x1], 1 }
 0x156   :  { %321 = vsyncpa [#allocation6], 1 }
 0x157   :  { %322 = vsyncpa [#allocation4], 1 }
 0x158   :  { %324 = vsyncpa [#allocation4 + $0x1], 1 }

</bundles_post_ra>
